<compile_context>
chip_gen: v7x
topology: tpu7x:2x2x1
jax: 0.10.0
libtpu: 0.0.40
codegen_flags: <defaults>
</compile_context>

<pallas_src>
import functools
import warnings

import jax
import jax.numpy as jnp
from jax.experimental import pallas as pl
from jax.experimental.pallas import tpu as pltpu

EPS = 1e-5
C_PAD = 128                            # lane-padded channel count (true C = 50)
VMEM_LIMIT_BYTES = 48 * 1024 * 1024    # < v7x's 64 MiB physical; > the 16/32 MiB defaults

_CompilerParams = getattr(pltpu, "CompilerParams", None)
if _CompilerParams is None:            # very old jax fallback
    _CompilerParams = getattr(pltpu, "TPUCompilerParams")


# ----------------------------------------------------------------------------------------------
# pltpu.roll direction probe (guarantees correct shift semantics).
# ----------------------------------------------------------------------------------------------
def _roll_probe_kernel(x_ref, a_ref, b_ref):
    a_ref[...] = pltpu.roll(x_ref[...], 1, axis=0)
    b_ref[...] = pltpu.roll(x_ref[...], x_ref.shape[0] - 1, axis=0)


@functools.lru_cache(maxsize=None)
def _detect_roll_mode():
    """+1 if pltpu.roll matches jnp.roll, -1 if opposite convention, 0 -> slice+concat."""
    try:
        rows = 16
        x = jnp.tile(jnp.arange(rows, dtype=jnp.float32)[:, None], (1, 128))
        vmem = pl.BlockSpec(memory_space=pltpu.MemorySpace.VMEM)
        a, b = pl.pallas_call(
            _roll_probe_kernel,
            out_shape=(jax.ShapeDtypeStruct((rows, 128), jnp.float32),
                       jax.ShapeDtypeStruct((rows, 128), jnp.float32)),
            in_specs=[vmem],
            out_specs=(vmem, vmem),
        )(x)
        a0 = float(jax.device_get(a)[0, 0])
        b0 = float(jax.device_get(b)[0, 0])
        if a0 == float(rows - 1) and b0 == 1.0:
            return 1
        if a0 == 1.0 and b0 == float(rows - 1):
            return -1
        warnings.warn("pltpu.roll produced an unexpected pattern; falling back to the "
                      "(slower) slice+concat row-shift path.")
        return 0
    except Exception as e:   # pragma: no cover
        warnings.warn(f"pltpu.roll probe failed ({e!r}); falling back to the (slower) "
                      "slice+concat row-shift path.")
        return 0


def _shift_rows(x, d, roll_mode):
    """y[r] = x[(r + d) % R].  Circular; wrapped rows only ever land on masked / zero-weighted
    pad rows, guaranteed because Hp >= H + 2 >= H + max|shift| + 1."""
    if d == 0:
        return x
    rows = x.shape[0]
    if roll_mode == 0:
        d = d % rows
        return jnp.concatenate([x[d:, :], x[:d, :]], axis=0)
    return pltpu.roll(x, (-d * roll_mode) % rows, axis=0)


# ----------------------------------------------------------------------------------------------
# Kernels (one grid step = one zero-padded sample of Hp rows, 128 lane-padded channels).
# ----------------------------------------------------------------------------------------------
def _stats1_kernel(xcol_ref, w1_ref, s1_ref, *, H):
    """Pass 1: conv1 (no bias) + masked per-channel sum / sum-of-squares for BN1."""
    z1 = jnp.dot(xcol_ref[...], w1_ref[...], preferred_element_type=jnp.float32)  # (Hp, Cp)
    loc = jax.lax.broadcasted_iota(jnp.int32, z1.shape, 0)
    z1m = jnp.where((loc >= 1) & (loc <= H), z1, 0.0)       # conv1-valid rows: local 1..H
    s1_ref[...] = jnp.concatenate(
        [jnp.sum(z1m, axis=0, keepdims=True),
         jnp.sum(z1m * z1m, axis=0, keepdims=True)], axis=0)


def _mid_kernel(xcol_ref, w1_ref, sc1_ref, sh1_ref, w2f_ref, z2_ref, s2_ref,
                *, H, roll_mode):
    """Pass 2: conv1 (recomputed) + folded BN1 + ReLU + pool1 + fused conv2 + BN2 stats."""
    f32, bf16 = jnp.float32, jnp.bfloat16
    Hp, Cp = z2_ref.shape
    z1 = jnp.dot(xcol_ref[...], w1_ref[...], preferred_element_type=f32)
    y1 = jnp.maximum(z1 * sc1_ref[...] + sh1_ref[...], 0.0)             # BN1 (folded) + ReLU
    loc = jax.lax.broadcasted_iota(jnp.int32, (Hp, Cp), 0)
    valid2 = (loc >= 1) & (loc <= H - 1)                                # pool1/conv2/BN2 rows
    # MaxPool(2,1): max(row r, row r+1).  The mask both wipes pad/garbage rows and *is*
    # conv2's zero padding.
    p1 = jnp.where(valid2, jnp.maximum(y1, _shift_rows(y1, 1, roll_mode)), 0.0)
    # conv2 taps fused into one K=384 contraction on the MXU.
    lhs = jnp.concatenate([_shift_rows(p1, -1, roll_mode).astype(bf16),
                           p1.astype(bf16),
                           _shift_rows(p1, 1, roll_mode).astype(bf16)], axis=1)   # (Hp, 3*Cp)
    z2 = jnp.dot(lhs, w2f_ref[...], preferred_element_type=f32)
    z2m = jnp.where(valid2, z2, 0.0)
    s2_ref[...] = jnp.concatenate(
        [jnp.sum(z2m, axis=0, keepdims=True),
         jnp.sum(z2m * z2m, axis=0, keepdims=True)], axis=0)
    z2_ref[...] = z2


def _tail_kernel(z2_ref, sc2_ref, sh2_ref, wl_ref, out_ref, *, roll_mode):
    """Pass 3: folded BN2 + ReLU + pool2 + Linear partials (per-class per-channel sums)."""
    f32 = jnp.float32
    Hp, Cp = z2_ref.shape
    K = wl_ref.shape[0]
    nrows = out_ref.shape[0]
    y2 = jnp.maximum(z2_ref[...] * sc2_ref[...] + sh2_ref[...], 0.0)    # BN2 (folded) + ReLU
    p2 = jnp.maximum(y2, _shift_rows(y2, 1, roll_mode))                 # pool2
    # wl is zero outside the valid rows/channels, so garbage rows contribute nothing.
    # Only cheap sublane (axis=0) reductions are done here; the final 128-lane reduction of
    # the tiny (N, K, 128) partials happens in XLA glue.
    riota = jax.lax.broadcasted_iota(jnp.int32, (nrows, Cp), 0)
    acc = jnp.zeros((nrows, Cp), f32)
    for k in range(K):
        sk = jnp.sum(p2 * wl_ref[k], axis=0, keepdims=True)             # (1, Cp)
        acc = acc + jnp.where(riota == k, sk, 0.0)
    out_ref[...] = acc


# ----------------------------------------------------------------------------------------------
# One-time parameter layout (hoisted out of the per-call path).
# ----------------------------------------------------------------------------------------------
def _round_up(a, b):
    return (a + b - 1) // b * b


def prepare_params(params, H):
    conv1_w, conv1_b, g1, be1, conv2_w, conv2_b, g2, be2, lin_w, lin_b = params
    del conv1_b, conv2_b   # training-mode BN subtracts the batch mean -> conv biases cancel
    Ct, _, _, W = conv1_w.shape
    K = lin_w.shape[0]
    Cp = C_PAD
    H2 = H - 2
    Hp = _round_up(H + 2, 8)
    assert Hp >= H + 2 and K <= 8
    f32, bf16 = jnp.float32, jnp.bfloat16

    # conv1 -> im2col weights (3W, Cp); row index = kh*W + kw.
    w1 = conv1_w[:, 0, :, :].reshape(Ct, 3 * W).T
    w1 = jnp.pad(w1, ((0, 0), (0, Cp - Ct))).astype(bf16)

    # conv2 -> fused-tap weights (3*Cp, Cp): rows [kh*Cp:(kh+1)*Cp] hold w2[kh][c_in, c_out].
    w2 = jnp.transpose(conv2_w[:, :, :, 0], (2, 1, 0))                  # (3, Cin, Cout)
    w2 = jnp.pad(w2, ((0, 0), (0, Cp - Ct), (0, Cp - Ct)))
    w2f = w2.reshape(3 * Cp, Cp).astype(bf16)

    def lanepad(v):
        return jnp.pad(v.astype(f32), (0, Cp - Ct)).reshape(1, Cp)

    # Linear -> a single (K, Hp, Cp) bf16 weight image (NOT broadcast over the batch).
    # PyTorch flatten is channel-major: lin_w[k, c*(H-2) + h] -> wl[k, h+1, c].
    wl = jnp.transpose(lin_w.reshape(K, Ct, H2), (0, 2, 1))             # (K, H2, Ct)
    wl = jnp.pad(wl, ((0, 0), (1, Hp - 1 - H2), (0, Cp - Ct))).astype(bf16)

    return dict(w1=w1, w2f=w2f, g1=lanepad(g1), be1=lanepad(be1),
                g2=lanepad(g2), be2=lanepad(be2), wl=wl, lb=lin_b.astype(f32))


# ----------------------------------------------------------------------------------------------
# Forward: per-call input im2col + 3 row-tiled pallas_calls + tiny BN-stat glue.
# ----------------------------------------------------------------------------------------------
@functools.partial(jax.jit, static_argnums=(2,))
def _forward_impl(x, prep, roll_mode):
    f32, bf16 = jnp.float32, jnp.bfloat16
    N, _, H, W = x.shape
    Cp = C_PAD
    K, Hp, _ = prep["wl"].shape
    assert Hp == _round_up(H + 2, 8)
    cnt1, cnt2 = float(N * H), float(N * (H - 1))

    # per-sample zero-padded row grid + conv1 im2col (the only per-call XLA glue on x)
    xg = jnp.zeros((N, Hp, W), f32).at[:, 1:H + 1, :].set(x[:, 0, :, :])
    xgp = jnp.pad(xg, ((0, 0), (1, 1), (0, 0)))
    xcol = jnp.concatenate([xgp[:, kh:kh + Hp, :] for kh in range(3)], axis=-1)
    xcol = xcol.astype(bf16)                                            # (N, Hp, 3W)

    cparams = _CompilerParams(dimension_semantics=("parallel",),
                              vmem_limit_bytes=VMEM_LIMIT_BYTES)

    # ---- pass 1: BN1 batch statistics (per-sample partials, reduced in XLA) ----
    s1 = pl.pallas_call(
        functools.partial(_stats1_kernel, H=H),
        grid=(N,),
        in_specs=[pl.BlockSpec((None, Hp, 3 * W), lambda n: (n, 0, 0)),
                  pl.BlockSpec((3 * W, Cp), lambda n: (0, 0))],
        out_specs=pl.BlockSpec((None, 2, Cp), lambda n: (n, 0, 0)),
        out_shape=jax.ShapeDtypeStruct((N, 2, Cp), f32),
        compiler_params=cparams,
    )(xcol, prep["w1"])
    s1 = jnp.sum(s1, axis=0)                                            # (2, Cp)
    mean1 = s1[0:1] / cnt1
    var1 = jnp.maximum(s1[1:2] / cnt1 - mean1 * mean1, 0.0)
    scale1 = prep["g1"] * jax.lax.rsqrt(var1 + EPS)
    shift1 = prep["be1"] - mean1 * scale1

    # ---- pass 2: conv1 + BN1 + ReLU + pool1 + fused conv2 (+ BN2 statistics) ----
    z2, s2 = pl.pallas_call(
        functools.partial(_mid_kernel, H=H, roll_mode=roll_mode),
        grid=(N,),
        in_specs=[pl.BlockSpec((None, Hp, 3 * W), lambda n: (n, 0, 0)),
                  pl.BlockSpec((3 * W, Cp), lambda n: (0, 0)),
                  pl.BlockSpec((1, Cp), lambda n: (0, 0)),
                  pl.BlockSpec((1, Cp), lambda n: (0, 0)),
                  pl.BlockSpec((3 * Cp, Cp), lambda n: (0, 0))],
        out_specs=(pl.BlockSpec((None, Hp, Cp), lambda n: (n, 0, 0)),
                   pl.BlockSpec((None, 2, Cp), lambda n: (n, 0, 0))),
        out_shape=(jax.ShapeDtypeStruct((N, Hp, Cp), f32),
                   jax.ShapeDtypeStruct((N, 2, Cp), f32)),
        compiler_params=cparams,
    )(xcol, prep["w1"], scale1, shift1, prep["w2f"])
    s2 = jnp.sum(s2, axis=0)
    mean2 = s2[0:1] / cnt2
    var2 = jnp.maximum(s2[1:2] / cnt2 - mean2 * mean2, 0.0)
    scale2 = prep["g2"] * jax.lax.rsqrt(var2 + EPS)
    shift2 = prep["be2"] - mean2 * scale2

    # ---- pass 3: BN2 + ReLU + pool2 + Linear partials ----
    part = pl.pallas_call(
        functools.partial(_tail_kernel, roll_mode=roll_mode),
        grid=(N,),
        in_specs=[pl.BlockSpec((None, Hp, Cp), lambda n: (n, 0, 0)),
                  pl.BlockSpec((1, Cp), lambda n: (0, 0)),
                  pl.BlockSpec((1, Cp), lambda n: (0, 0)),
                  pl.BlockSpec((K, Hp, Cp), lambda n: (0, 0, 0))],
        out_specs=pl.BlockSpec((None, 8, Cp), lambda n: (n, 0, 0)),
        out_shape=jax.ShapeDtypeStruct((N, 8, Cp), f32),
        compiler_params=cparams,
    )(z2, scale2, shift2, prep["wl"])

    # final tiny reduction of the (N, K, 128) per-channel partials + bias (XLA glue)
    return jnp.sum(part[:, :K, :], axis=-1) + prep["lb"][None, :]


def net_forward(x, prep):
    """x: (N, 1, H, W) float32 (NCHW, like PyTorch). prep: prepare_params(params, H)."""
    return _forward_impl(x, prep, _detect_roll_mode())


# ----------------------------------------------------------------------------------------------
# Deterministic synthetic parameters + pure-JAX (XLA, f32-HIGHEST) reference.
# ----------------------------------------------------------------------------------------------
def init_params(key, H, W, C, K):
    H2 = H - 2
    k = jax.random.split(key, 10)
    conv1_w = 0.2 * jax.random.normal(k[0], (C, 1, 3, W), jnp.float32)
    conv1_b = 0.1 * jax.random.normal(k[1], (C,), jnp.float32)
    g1 = 1.0 + 0.1 * jax.random.normal(k[2], (C,), jnp.float32)
    be1 = 0.1 * jax.random.normal(k[3], (C,), jnp.float32)
    conv2_w = 0.1 * jax.random.normal(k[4], (C, C, 3, 1), jnp.float32)
    conv2_b = 0.1 * jax.random.normal(k[5], (C,), jnp.float32)
    g2 = 1.0 + 0.1 * jax.random.normal(k[6], (C,), jnp.float32)
    be2 = 0.1 * jax.random.normal(k[7], (C,), jnp.float32)
    lin_w = 0.05 * jax.random.normal(k[8], (K, C * H2), jnp.float32)
    lin_b = 0.1 * jax.random.normal(k[9], (K,), jnp.float32)
    return (conv1_w, conv1_b, g1, be1, conv2_w, conv2_b, g2, be2, lin_w, lin_b)


def reference_forward(x, params):
    """Pure-JAX reference of the PyTorch forward pass (training-mode BatchNorm), f32."""
    conv1_w, conv1_b, g1, be1, conv2_w, conv2_b, g2, be2, lin_w, lin_b = params
    dn = ("NCHW", "OIHW", "NCHW")
    hp = jax.lax.Precision.HIGHEST

    y = jax.lax.conv_general_dilated(x, conv1_w, (1, 1), ((1, 1), (0, 0)),
                                     dimension_numbers=dn, precision=hp)
    y = y + conv1_b[None, :, None, None]
    m = jnp.mean(y, axis=(0, 2, 3), keepdims=True)
    v = jnp.mean((y - m) ** 2, axis=(0, 2, 3), keepdims=True)
    y = (y - m) * jax.lax.rsqrt(v + EPS) * g1[None, :, None, None] + be1[None, :, None, None]
    y = jnp.maximum(y, 0.0)
    y = jnp.maximum(y[:, :, :-1, :], y[:, :, 1:, :])

    y = jax.lax.conv_general_dilated(y, conv2_w, (1, 1), ((1, 1), (0, 0)),
                                     dimension_numbers=dn, precision=hp)
    y = y + conv2_b[None, :, None, None]
    m = jnp.mean(y, axis=(0, 2, 3), keepdims=True)
    v = jnp.mean((y - m) ** 2, axis=(0, 2, 3), keepdims=True)
    y = (y - m) * jax.lax.rsqrt(v + EPS) * g2[None, :, None, None] + be2[None, :, None, None]
    y = jnp.maximum(y, 0.0)
    y = jnp.maximum(y[:, :, :-1, :], y[:, :, 1:, :])

    y = y.reshape(y.shape[0], -1)                 # PyTorch x.view(N, -1): (c, h) order
    return jnp.dot(y, lin_w.T, precision=hp) + lin_b


if __name__ == "__main__":
    # Small shapes consistent with the module: NUM_OF_TIME_SAMPLES -> 16 (instead of 10000),
    # W = NUM_OF_CLASSIFICATION_PARAMETERS = 2, C = NUM_OF_CONV_FILTERS = 50,
    # K = NUM_OF_CONGESTION_CONTROL_LABELING = 3, batch = 2.
    N, H, W, C, K = 2, 16, 2, 50, 3

    key = jax.random.PRNGKey(0)
    kx, kp = jax.random.split(key)
    x = jax.random.normal(kx, (N, 1, H, W), jnp.float32)
    params = init_params(kp, H, W, C, K)
    prep = prepare_params(params, H)              # one-time static weight layout

    out = jax.block_until_ready(net_forward(x, prep))
    ref = jax.block_until_ready(reference_forward(x, params))

    # Kernel matmuls / Linear weights use bf16 operands (f32 accumulation) on the MXU; the
    # reference runs in full f32, so agreement is checked at bf16-level tolerance.
    if not jnp.allclose(out, ref, rtol=2e-2, atol=2e-2):
        raise AssertionError(
            f"Pallas vs reference mismatch, max abs diff = {jnp.max(jnp.abs(out - ref))}")
    print("KERNEL_OK")
</pallas_src>

<mosaic_0001>
module attributes {stable_mosaic.version = 11 : i64} {
  func.func @_roll_probe_kernel(%arg0: memref<16x128xf32, #tpu.memory_space<vmem>>, %arg1: memref<16x128xf32, #tpu.memory_space<vmem>>, %arg2: memref<16x128xf32, #tpu.memory_space<vmem>>) attributes {dimension_semantics = [], scalar_prefetch = 0 : i64, scratch_operands = 0 : i64, tpu.core_type = #tpu.core_type<tc>} {
    %c0 = arith.constant 0 : index
    %c0_0 = arith.constant 0 : index
    %0 = vector.load %arg0[%c0, %c0_0] : memref<16x128xf32, #tpu.memory_space<vmem>>, vector<16x128xf32>
    %c1_i32 = arith.constant 1 : i32
    %1 = tpu.dynamic_rotate %0 by %c1_i32 dim 0 : vector<16x128xf32>, i32 -> vector<16x128xf32>
    %c0_1 = arith.constant 0 : index
    %c0_2 = arith.constant 0 : index
    %2 = vector.load %arg1[%c0_1, %c0_2] : memref<16x128xf32, #tpu.memory_space<vmem>>, vector<16x128xf32>
    tpu.vector_store %arg1[%c0_1, %c0_2], %1 {strides = array<i32>} : memref<16x128xf32, #tpu.memory_space<vmem>>, vector<16x128xf32>,
    %c0_3 = arith.constant 0 : index
    %c0_4 = arith.constant 0 : index
    %3 = vector.load %arg0[%c0_3, %c0_4] : memref<16x128xf32, #tpu.memory_space<vmem>>, vector<16x128xf32>
    %c15_i32 = arith.constant 15 : i32
    %4 = tpu.dynamic_rotate %3 by %c15_i32 dim 0 : vector<16x128xf32>, i32 -> vector<16x128xf32>
    %c0_5 = arith.constant 0 : index
    %c0_6 = arith.constant 0 : index
    %5 = vector.load %arg2[%c0_5, %c0_6] : memref<16x128xf32, #tpu.memory_space<vmem>>, vector<16x128xf32>
    tpu.vector_store %arg2[%c0_5, %c0_6], %4 {strides = array<i32>} : memref<16x128xf32, #tpu.memory_space<vmem>>, vector<16x128xf32>,
    return
  }
}

module attributes {stable_mosaic.version = 11 : i64} {
  func.func @_stats1_kernel(%arg0: i32, %arg1: memref<1x24x6xbf16, #tpu.memory_space<vmem>>, %arg2: memref<6x128xbf16, #tpu.memory_space<vmem>>, %arg3: memref<1x2x128xf32, #tpu.memory_space<vmem>>) attributes {dimension_semantics = [#tpu.dimension_semantics<parallel>], iteration_bounds = array<i64: 2>, scalar_prefetch = 0 : i64, scratch_operands = 0 : i64, tpu.core_type = #tpu.core_type<tc>, window_params = [{transform_indices = @transform_0, window_bounds = array<i64: 1, 24, 6>}, {pipeline_mode = #tpu.pipeline_mode<synchronous>, transform_indices = @transform_1, window_bounds = array<i64: 6, 128>}, {transform_indices = @transform_2, window_bounds = array<i64: 1, 2, 128>}]} {
    %c0 = arith.constant 0 : index
    %c0_0 = arith.constant 0 : index
    %c0_1 = arith.constant 0 : index
    %0 = vector.load %arg1[%c0, %c0_0, %c0_1] : memref<1x24x6xbf16, #tpu.memory_space<vmem>>, vector<1x24x6xbf16>
    %1 = vector.shape_cast %0 : vector<1x24x6xbf16> to vector<24x6xbf16>
    %c0_2 = arith.constant 0 : index
    %c0_3 = arith.constant 0 : index
    %2 = vector.load %arg2[%c0_2, %c0_3] : memref<6x128xbf16, #tpu.memory_space<vmem>>, vector<6x128xbf16>
    %cst = arith.constant dense<0.000000e+00> : vector<24x128xf32>
    %3 = tpu.matmul %1, %2, %cst {dimension_numbers = #tpu.dot_dimension_numbers<[1], [0], [0], [1], [0, 0, 1, 1], [], []>} : vector<24x6xbf16>, vector<6x128xbf16>, vector<24x128xf32> -> vector<24x128xf32>
    %4 = tpu.iota {dimensions = array<i32: 0>} : vector<24x128xi32>
    %c1_i32 = arith.constant 1 : i32
    %5 = vector.broadcast %c1_i32 : i32 to vector<24x128xi32>
    %6 = arith.cmpi sge, %4, %5 : vector<24x128xi32>
    %c16_i32 = arith.constant 16 : i32
    %7 = vector.broadcast %c16_i32 : i32 to vector<24x128xi32>
    %8 = arith.cmpi sle, %4, %7 : vector<24x128xi32>
    %9 = arith.andi %6, %8 : vector<24x128xi1>
    %cst_4 = arith.constant 0.000000e+00 : f32
    %10 = vector.broadcast %cst_4 : f32 to vector<24x128xf32>
    %11 = arith.select %9, %3, %10 : vector<24x128xi1>, vector<24x128xf32>
    %cst_5 = arith.constant dense<0.000000e+00> : vector<128xf32>
    %12 = vector.multi_reduction <add>, %11, %cst_5 [0] : vector<24x128xf32> to vector<128xf32>
    %13 = vector.shape_cast %12 : vector<128xf32> to vector<1x128xf32>
    %14 = arith.mulf %11, %11 : vector<24x128xf32>
    %cst_6 = arith.constant dense<0.000000e+00> : vector<128xf32>
    %15 = vector.multi_reduction <add>, %14, %cst_6 [0] : vector<24x128xf32> to vector<128xf32>
    %16 = vector.shape_cast %15 : vector<128xf32> to vector<1x128xf32>
    %17 = tpu.concatenate %13, %16 in 0 : vector<1x128xf32>, vector<1x128xf32> -> vector<2x128xf32>
    %c0_7 = arith.constant 0 : index
    %c0_8 = arith.constant 0 : index
    %c0_9 = arith.constant 0 : index
    %18 = vector.load %arg3[%c0_7, %c0_8, %c0_9] : memref<1x2x128xf32, #tpu.memory_space<vmem>>, vector<1x2x128xf32>
    %19 = vector.shape_cast %18 : vector<1x2x128xf32> to vector<2x128xf32>
    %20 = vector.shape_cast %17 : vector<2x128xf32> to vector<1x2x128xf32>
    tpu.vector_store %arg3[%c0_7, %c0_8, %c0_9], %20 {strides = array<i32>} : memref<1x2x128xf32, #tpu.memory_space<vmem>>, vector<1x2x128xf32>,
    return
  }
  func.func @transform_0(%arg0: i32) -> (i32, i32, i32) {
    %c0_i32 = arith.constant 0 : i32
    %c0_i32_0 = arith.constant 0 : i32
    %c0_i32_1 = arith.constant 0 : i32
    return %arg0, %c0_i32, %c0_i32_0 : i32, i32, i32
  }
  func.func @transform_1(%arg0: i32) -> (i32, i32) {
    %c0_i32 = arith.constant 0 : i32
    %c0_i32_0 = arith.constant 0 : i32
    %c0_i32_1 = arith.constant 0 : i32
    return %c0_i32, %c0_i32_0 : i32, i32
  }
  func.func @transform_2(%arg0: i32) -> (i32, i32, i32) {
    %c0_i32 = arith.constant 0 : i32
    %c0_i32_0 = arith.constant 0 : i32
    %c0_i32_1 = arith.constant 0 : i32
    return %arg0, %c0_i32, %c0_i32_0 : i32, i32, i32
  }
}

module attributes {stable_mosaic.version = 11 : i64} {
  func.func @_tail_kernel(%arg0: i32, %arg1: memref<1x24x128xf32, #tpu.memory_space<vmem>>, %arg2: memref<1x128xf32, #tpu.memory_space<vmem>>, %arg3: memref<1x128xf32, #tpu.memory_space<vmem>>, %arg4: memref<3x24x128xbf16, #tpu.memory_space<vmem>>, %arg5: memref<1x8x128xf32, #tpu.memory_space<vmem>>) attributes {dimension_semantics = [#tpu.dimension_semantics<parallel>], iteration_bounds = array<i64: 2>, scalar_prefetch = 0 : i64, scratch_operands = 0 : i64, tpu.core_type = #tpu.core_type<tc>, window_params = [{transform_indices = @transform_0, window_bounds = array<i64: 1, 24, 128>}, {pipeline_mode = #tpu.pipeline_mode<synchronous>, transform_indices = @transform_1, window_bounds = array<i64: 1, 128>}, {pipeline_mode = #tpu.pipeline_mode<synchronous>, transform_indices = @transform_2, window_bounds = array<i64: 1, 128>}, {pipeline_mode = #tpu.pipeline_mode<synchronous>, transform_indices = @transform_3, window_bounds = array<i64: 3, 24, 128>}, {transform_indices = @transform_4, window_bounds = array<i64: 1, 8, 128>}]} {
    %c0 = arith.constant 0 : index
    %c0_0 = arith.constant 0 : index
    %c0_1 = arith.constant 0 : index
    %0 = vector.load %arg1[%c0, %c0_0, %c0_1] : memref<1x24x128xf32, #tpu.memory_space<vmem>>, vector<1x24x128xf32>
    %1 = vector.shape_cast %0 : vector<1x24x128xf32> to vector<24x128xf32>
    %c0_2 = arith.constant 0 : index
    %c0_3 = arith.constant 0 : index
    %2 = vector.load %arg2[%c0_2, %c0_3] : memref<1x128xf32, #tpu.memory_space<vmem>>, vector<1x128xf32>
    %3 = vector.broadcast %2 : vector<1x128xf32> to vector<24x128xf32>
    %4 = arith.mulf %1, %3 : vector<24x128xf32>
    %c0_4 = arith.constant 0 : index
    %c0_5 = arith.constant 0 : index
    %5 = vector.load %arg3[%c0_4, %c0_5] : memref<1x128xf32, #tpu.memory_space<vmem>>, vector<1x128xf32>
    %6 = vector.broadcast %5 : vector<1x128xf32> to vector<24x128xf32>
    %7 = arith.addf %4, %6 : vector<24x128xf32>
    %cst = arith.constant 0.000000e+00 : f32
    %8 = vector.broadcast %cst : f32 to vector<24x128xf32>
    %9 = arith.maximumf %7, %8 : vector<24x128xf32>
    %10 = vector.extract_strided_slice %9 {offsets = [1, 0], sizes = [23, 128], strides = [1, 1]} : vector<24x128xf32> to vector<23x128xf32>
    %11 = vector.extract_strided_slice %9 {offsets = [0, 0], sizes = [1, 128], strides = [1, 1]} : vector<24x128xf32> to vector<1x128xf32>
    %12 = tpu.concatenate %10, %11 in 0 : vector<23x128xf32>, vector<1x128xf32> -> vector<24x128xf32>
    %13 = arith.maximumf %9, %12 : vector<24x128xf32>
    %14 = tpu.iota {dimensions = array<i32: 0>} : vector<8x128xi32>
    %cst_6 = arith.constant 0.000000e+00 : f32
    %15 = vector.broadcast %cst_6 : f32 to vector<8x128xf32>
    %c0_7 = arith.constant 0 : index
    %c0_8 = arith.constant 0 : index
    %c0_9 = arith.constant 0 : index
    %16 = vector.load %arg4[%c0_7, %c0_8, %c0_9] : memref<3x24x128xbf16, #tpu.memory_space<vmem>>, vector<1x24x128xbf16>
    %17 = vector.shape_cast %16 : vector<1x24x128xbf16> to vector<24x128xbf16>
    %18 = arith.extf %17 : vector<24x128xbf16> to vector<24x128xf32>
    %19 = arith.mulf %13, %18 : vector<24x128xf32>
    %cst_10 = arith.constant dense<0.000000e+00> : vector<128xf32>
    %20 = vector.multi_reduction <add>, %19, %cst_10 [0] : vector<24x128xf32> to vector<128xf32>
    %21 = vector.shape_cast %20 : vector<128xf32> to vector<1x128xf32>
    %c0_i32 = arith.constant 0 : i32
    %22 = vector.broadcast %c0_i32 : i32 to vector<8x128xi32>
    %23 = arith.cmpi eq, %14, %22 : vector<8x128xi32>
    %cst_11 = arith.constant 0.000000e+00 : f32
    %24 = vector.shape_cast %21 : vector<1x128xf32> to vector<1x128xf32>
    %25 = vector.broadcast %24 : vector<1x128xf32> to vector<8x128xf32>
    %26 = vector.broadcast %cst_11 : f32 to vector<8x128xf32>
    %27 = arith.select %23, %25, %26 : vector<8x128xi1>, vector<8x128xf32>
    %28 = arith.addf %15, %27 : vector<8x128xf32>
    %c1 = arith.constant 1 : index
    %c0_12 = arith.constant 0 : index
    %c0_13 = arith.constant 0 : index
    %29 = vector.load %arg4[%c1, %c0_12, %c0_13] : memref<3x24x128xbf16, #tpu.memory_space<vmem>>, vector<1x24x128xbf16>
    %30 = vector.shape_cast %29 : vector<1x24x128xbf16> to vector<24x128xbf16>
    %31 = arith.extf %30 : vector<24x128xbf16> to vector<24x128xf32>
    %32 = arith.mulf %13, %31 : vector<24x128xf32>
    %cst_14 = arith.constant dense<0.000000e+00> : vector<128xf32>
    %33 = vector.multi_reduction <add>, %32, %cst_14 [0] : vector<24x128xf32> to vector<128xf32>
    %34 = vector.shape_cast %33 : vector<128xf32> to vector<1x128xf32>
    %c1_i32 = arith.constant 1 : i32
    %35 = vector.broadcast %c1_i32 : i32 to vector<8x128xi32>
    %36 = arith.cmpi eq, %14, %35 : vector<8x128xi32>
    %cst_15 = arith.constant 0.000000e+00 : f32
    %37 = vector.shape_cast %34 : vector<1x128xf32> to vector<1x128xf32>
    %38 = vector.broadcast %37 : vector<1x128xf32> to vector<8x128xf32>
    %39 = vector.broadcast %cst_15 : f32 to vector<8x128xf32>
    %40 = arith.select %36, %38, %39 : vector<8x128xi1>, vector<8x128xf32>
    %41 = arith.addf %28, %40 : vector<8x128xf32>
    %c2 = arith.constant 2 : index
    %c0_16 = arith.constant 0 : index
    %c0_17 = arith.constant 0 : index
    %42 = vector.load %arg4[%c2, %c0_16, %c0_17] : memref<3x24x128xbf16, #tpu.memory_space<vmem>>, vector<1x24x128xbf16>
    %43 = vector.shape_cast %42 : vector<1x24x128xbf16> to vector<24x128xbf16>
    %44 = arith.extf %43 : vector<24x128xbf16> to vector<24x128xf32>
    %45 = arith.mulf %13, %44 : vector<24x128xf32>
    %cst_18 = arith.constant dense<0.000000e+00> : vector<128xf32>
    %46 = vector.multi_reduction <add>, %45, %cst_18 [0] : vector<24x128xf32> to vector<128xf32>
    %47 = vector.shape_cast %46 : vector<128xf32> to vector<1x128xf32>
    %c2_i32 = arith.constant 2 : i32
    %48 = vector.broadcast %c2_i32 : i32 to vector<8x128xi32>
    %49 = arith.cmpi eq, %14, %48 : vector<8x128xi32>
    %cst_19 = arith.constant 0.000000e+00 : f32
    %50 = vector.shape_cast %47 : vector<1x128xf32> to vector<1x128xf32>
    %51 = vector.broadcast %50 : vector<1x128xf32> to vector<8x128xf32>
    %52 = vector.broadcast %cst_19 : f32 to vector<8x128xf32>
    %53 = arith.select %49, %51, %52 : vector<8x128xi1>, vector<8x128xf32>
    %54 = arith.addf %41, %53 : vector<8x128xf32>
    %c0_20 = arith.constant 0 : index
    %c0_21 = arith.constant 0 : index
    %c0_22 = arith.constant 0 : index
    %55 = vector.load %arg5[%c0_20, %c0_21, %c0_22] : memref<1x8x128xf32, #tpu.memory_space<vmem>>, vector<1x8x128xf32>
    %56 = vector.shape_cast %55 : vector<1x8x128xf32> to vector<8x128xf32>
    %57 = vector.shape_cast %54 : vector<8x128xf32> to vector<1x8x128xf32>
    tpu.vector_store %arg5[%c0_20, %c0_21, %c0_22], %57 {strides = array<i32>} : memref<1x8x128xf32, #tpu.memory_space<vmem>>, vector<1x8x128xf32>,
    return
  }
  func.func @transform_0(%arg0: i32) -> (i32, i32, i32) {
    %c0_i32 = arith.constant 0 : i32
    %c0_i32_0 = arith.constant 0 : i32
    %c0_i32_1 = arith.constant 0 : i32
    return %arg0, %c0_i32, %c0_i32_0 : i32, i32, i32
  }
  func.func @transform_1(%arg0: i32) -> (i32, i32) {
    %c0_i32 = arith.constant 0 : i32
    %c0_i32_0 = arith.constant 0 : i32
    %c0_i32_1 = arith.constant 0 : i32
    return %c0_i32, %c0_i32_0 : i32, i32
  }
  func.func @transform_2(%arg0: i32) -> (i32, i32) {
    %c0_i32 = arith.constant 0 : i32
    %c0_i32_0 = arith.constant 0 : i32
    %c0_i32_1 = arith.constant 0 : i32
    return %c0_i32, %c0_i32_0 : i32, i32
  }
  func.func @transform_3(%arg0: i32) -> (i32, i32, i32) {
    %c0_i32 = arith.constant 0 : i32
    %c0_i32_0 = arith.constant 0 : i32
    %c0_i32_1 = arith.constant 0 : i32
    %c0_i32_2 = arith.constant 0 : i32
    return %c0_i32, %c0_i32_0, %c0_i32_1 : i32, i32, i32
  }
  func.func @transform_4(%arg0: i32) -> (i32, i32, i32) {
    %c0_i32 = arith.constant 0 : i32
    %c0_i32_0 = arith.constant 0 : i32
    %c0_i32_1 = arith.constant 0 : i32
    return %arg0, %c0_i32, %c0_i32_0 : i32, i32, i32
  }
}

module attributes {stable_mosaic.version = 11 : i64} {
  func.func @_mid_kernel(%arg0: i32, %arg1: memref<1x24x6xbf16, #tpu.memory_space<vmem>>, %arg2: memref<6x128xbf16, #tpu.memory_space<vmem>>, %arg3: memref<1x128xf32, #tpu.memory_space<vmem>>, %arg4: memref<1x128xf32, #tpu.memory_space<vmem>>, %arg5: memref<384x128xbf16, #tpu.memory_space<vmem>>, %arg6: memref<1x24x128xf32, #tpu.memory_space<vmem>>, %arg7: memref<1x2x128xf32, #tpu.memory_space<vmem>>) attributes {dimension_semantics = [#tpu.dimension_semantics<parallel>], iteration_bounds = array<i64: 2>, scalar_prefetch = 0 : i64, scratch_operands = 0 : i64, tpu.core_type = #tpu.core_type<tc>, window_params = [{transform_indices = @transform_0, window_bounds = array<i64: 1, 24, 6>}, {pipeline_mode = #tpu.pipeline_mode<synchronous>, transform_indices = @transform_1, window_bounds = array<i64: 6, 128>}, {pipeline_mode = #tpu.pipeline_mode<synchronous>, transform_indices = @transform_2, window_bounds = array<i64: 1, 128>}, {pipeline_mode = #tpu.pipeline_mode<synchronous>, transform_indices = @transform_3, window_bounds = array<i64: 1, 128>}, {pipeline_mode = #tpu.pipeline_mode<synchronous>, transform_indices = @transform_4, window_bounds = array<i64: 384, 128>}, {transform_indices = @transform_5, window_bounds = array<i64: 1, 24, 128>}, {transform_indices = @transform_6, window_bounds = array<i64: 1, 2, 128>}]} {
    %c0 = arith.constant 0 : index
    %c0_0 = arith.constant 0 : index
    %c0_1 = arith.constant 0 : index
    %0 = vector.load %arg1[%c0, %c0_0, %c0_1] : memref<1x24x6xbf16, #tpu.memory_space<vmem>>, vector<1x24x6xbf16>
    %1 = vector.shape_cast %0 : vector<1x24x6xbf16> to vector<24x6xbf16>
    %c0_2 = arith.constant 0 : index
    %c0_3 = arith.constant 0 : index
    %2 = vector.load %arg2[%c0_2, %c0_3] : memref<6x128xbf16, #tpu.memory_space<vmem>>, vector<6x128xbf16>
    %cst = arith.constant dense<0.000000e+00> : vector<24x128xf32>
    %3 = tpu.matmul %1, %2, %cst {dimension_numbers = #tpu.dot_dimension_numbers<[1], [0], [0], [1], [0, 0, 1, 1], [], []>} : vector<24x6xbf16>, vector<6x128xbf16>, vector<24x128xf32> -> vector<24x128xf32>
    %c0_4 = arith.constant 0 : index
    %c0_5 = arith.constant 0 : index
    %4 = vector.load %arg3[%c0_4, %c0_5] : memref<1x128xf32, #tpu.memory_space<vmem>>, vector<1x128xf32>
    %5 = vector.broadcast %4 : vector<1x128xf32> to vector<24x128xf32>
    %6 = arith.mulf %3, %5 : vector<24x128xf32>
    %c0_6 = arith.constant 0 : index
    %c0_7 = arith.constant 0 : index
    %7 = vector.load %arg4[%c0_6, %c0_7] : memref<1x128xf32, #tpu.memory_space<vmem>>, vector<1x128xf32>
    %8 = vector.broadcast %7 : vector<1x128xf32> to vector<24x128xf32>
    %9 = arith.addf %6, %8 : vector<24x128xf32>
    %cst_8 = arith.constant 0.000000e+00 : f32
    %10 = vector.broadcast %cst_8 : f32 to vector<24x128xf32>
    %11 = arith.maximumf %9, %10 : vector<24x128xf32>
    %12 = tpu.iota {dimensions = array<i32: 0>} : vector<24x128xi32>
    %c1_i32 = arith.constant 1 : i32
    %13 = vector.broadcast %c1_i32 : i32 to vector<24x128xi32>
    %14 = arith.cmpi sge, %12, %13 : vector<24x128xi32>
    %c15_i32 = arith.constant 15 : i32
    %15 = vector.broadcast %c15_i32 : i32 to vector<24x128xi32>
    %16 = arith.cmpi sle, %12, %15 : vector<24x128xi32>
    %17 = arith.andi %14, %16 : vector<24x128xi1>
    %18 = vector.extract_strided_slice %11 {offsets = [1, 0], sizes = [23, 128], strides = [1, 1]} : vector<24x128xf32> to vector<23x128xf32>
    %19 = vector.extract_strided_slice %11 {offsets = [0, 0], sizes = [1, 128], strides = [1, 1]} : vector<24x128xf32> to vector<1x128xf32>
    %20 = tpu.concatenate %18, %19 in 0 : vector<23x128xf32>, vector<1x128xf32> -> vector<24x128xf32>
    %21 = arith.maximumf %11, %20 : vector<24x128xf32>
    %cst_9 = arith.constant 0.000000e+00 : f32
    %22 = vector.broadcast %cst_9 : f32 to vector<24x128xf32>
    %23 = arith.select %17, %21, %22 : vector<24x128xi1>, vector<24x128xf32>
    %24 = vector.extract_strided_slice %23 {offsets = [23, 0], sizes = [1, 128], strides = [1, 1]} : vector<24x128xf32> to vector<1x128xf32>
    %25 = vector.extract_strided_slice %23 {offsets = [0, 0], sizes = [23, 128], strides = [1, 1]} : vector<24x128xf32> to vector<23x128xf32>
    %26 = tpu.concatenate %24, %25 in 0 : vector<1x128xf32>, vector<23x128xf32> -> vector<24x128xf32>
    %27 = arith.truncf %26 : vector<24x128xf32> to vector<24x128xbf16>
    %28 = arith.truncf %23 : vector<24x128xf32> to vector<24x128xbf16>
    %29 = vector.extract_strided_slice %23 {offsets = [1, 0], sizes = [23, 128], strides = [1, 1]} : vector<24x128xf32> to vector<23x128xf32>
    %30 = vector.extract_strided_slice %23 {offsets = [0, 0], sizes = [1, 128], strides = [1, 1]} : vector<24x128xf32> to vector<1x128xf32>
    %31 = tpu.concatenate %29, %30 in 0 : vector<23x128xf32>, vector<1x128xf32> -> vector<24x128xf32>
    %32 = arith.truncf %31 : vector<24x128xf32> to vector<24x128xbf16>
    %33 = tpu.concatenate %27, %28, %32 in 1 : vector<24x128xbf16>, vector<24x128xbf16>, vector<24x128xbf16> -> vector<24x384xbf16>
    %c0_10 = arith.constant 0 : index
    %c0_11 = arith.constant 0 : index
    %34 = vector.load %arg5[%c0_10, %c0_11] : memref<384x128xbf16, #tpu.memory_space<vmem>>, vector<384x128xbf16>
    %cst_12 = arith.constant dense<0.000000e+00> : vector<24x128xf32>
    %35 = tpu.matmul %33, %34, %cst_12 {dimension_numbers = #tpu.dot_dimension_numbers<[1], [0], [0], [1], [0, 0, 1, 1], [], []>} : vector<24x384xbf16>, vector<384x128xbf16>, vector<24x128xf32> -> vector<24x128xf32>
    %cst_13 = arith.constant 0.000000e+00 : f32
    %36 = vector.broadcast %cst_13 : f32 to vector<24x128xf32>
    %37 = arith.select %17, %35, %36 : vector<24x128xi1>, vector<24x128xf32>
    %cst_14 = arith.constant dense<0.000000e+00> : vector<128xf32>
    %38 = vector.multi_reduction <add>, %37, %cst_14 [0] : vector<24x128xf32> to vector<128xf32>
    %39 = vector.shape_cast %38 : vector<128xf32> to vector<1x128xf32>
    %40 = arith.mulf %37, %37 : vector<24x128xf32>
    %cst_15 = arith.constant dense<0.000000e+00> : vector<128xf32>
    %41 = vector.multi_reduction <add>, %40, %cst_15 [0] : vector<24x128xf32> to vector<128xf32>
    %42 = vector.shape_cast %41 : vector<128xf32> to vector<1x128xf32>
    %43 = tpu.concatenate %39, %42 in 0 : vector<1x128xf32>, vector<1x128xf32> -> vector<2x128xf32>
    %c0_16 = arith.constant 0 : index
    %c0_17 = arith.constant 0 : index
    %c0_18 = arith.constant 0 : index
    %44 = vector.load %arg7[%c0_16, %c0_17, %c0_18] : memref<1x2x128xf32, #tpu.memory_space<vmem>>, vector<1x2x128xf32>
    %45 = vector.shape_cast %44 : vector<1x2x128xf32> to vector<2x128xf32>
    %46 = vector.shape_cast %43 : vector<2x128xf32> to vector<1x2x128xf32>
    tpu.vector_store %arg7[%c0_16, %c0_17, %c0_18], %46 {strides = array<i32>} : memref<1x2x128xf32, #tpu.memory_space<vmem>>, vector<1x2x128xf32>,
    %c0_19 = arith.constant 0 : index
    %c0_20 = arith.constant 0 : index
    %c0_21 = arith.constant 0 : index
    %47 = vector.load %arg6[%c0_19, %c0_20, %c0_21] : memref<1x24x128xf32, #tpu.memory_space<vmem>>, vector<1x24x128xf32>
    %48 = vector.shape_cast %47 : vector<1x24x128xf32> to vector<24x128xf32>
    %49 = vector.shape_cast %35 : vector<24x128xf32> to vector<1x24x128xf32>
    tpu.vector_store %arg6[%c0_19, %c0_20, %c0_21], %49 {strides = array<i32>} : memref<1x24x128xf32, #tpu.memory_space<vmem>>, vector<1x24x128xf32>,
    return
  }
  func.func @transform_0(%arg0: i32) -> (i32, i32, i32) {
    %c0_i32 = arith.constant 0 : i32
    %c0_i32_0 = arith.constant 0 : i32
    %c0_i32_1 = arith.constant 0 : i32
    return %arg0, %c0_i32, %c0_i32_0 : i32, i32, i32
  }
  func.func @transform_1(%arg0: i32) -> (i32, i32) {
    %c0_i32 = arith.constant 0 : i32
    %c0_i32_0 = arith.constant 0 : i32
    %c0_i32_1 = arith.constant 0 : i32
    return %c0_i32, %c0_i32_0 : i32, i32
  }
  func.func @transform_2(%arg0: i32) -> (i32, i32) {
    %c0_i32 = arith.constant 0 : i32
    %c0_i32_0 = arith.constant 0 : i32
    %c0_i32_1 = arith.constant 0 : i32
    return %c0_i32, %c0_i32_0 : i32, i32
  }
  func.func @transform_3(%arg0: i32) -> (i32, i32) {
    %c0_i32 = arith.constant 0 : i32
    %c0_i32_0 = arith.constant 0 : i32
    %c0_i32_1 = arith.constant 0 : i32
    return %c0_i32, %c0_i32_0 : i32, i32
  }
  func.func @transform_4(%arg0: i32) -> (i32, i32) {
    %c0_i32 = arith.constant 0 : i32
    %c0_i32_0 = arith.constant 0 : i32
    %c0_i32_1 = arith.constant 0 : i32
    return %c0_i32, %c0_i32_0 : i32, i32
  }
  func.func @transform_5(%arg0: i32) -> (i32, i32, i32) {
    %c0_i32 = arith.constant 0 : i32
    %c0_i32_0 = arith.constant 0 : i32
    %c0_i32_1 = arith.constant 0 : i32
    return %arg0, %c0_i32, %c0_i32_0 : i32, i32, i32
  }
  func.func @transform_6(%arg0: i32) -> (i32, i32, i32) {
    %c0_i32 = arith.constant 0 : i32
    %c0_i32_0 = arith.constant 0 : i32
    %c0_i32_1 = arith.constant 0 : i32
    return %arg0, %c0_i32, %c0_i32_0 : i32, i32, i32
  }
}

</mosaic_0001>

<bundles_post_ra>
// kernel: tpu_custom_call.1
= control target key start
LH: loop header
LB: loop body
LE: loop exit
PB: predicated region body
PF: predicated region fallthrough
CT: control target
= control target key end

     0   :  { %8 = vsyncpa [#allocation3], 0  ;;  %s228_s0 = inlined_call_operand.hbm [shape: f32[16,128], index: 0, kind: input, shape index: {}]   ;;  %s229_s1 = inlined_call_operand.hbm [shape: f32[16,128], index: 1, kind: output, shape index: {0}]   ;;  %s230_s2 = inlined_call_operand.hbm [shape: f32[16,128], index: 2, kind: output, shape index: {1}]  }
   0x1   :  { %9 = vsyncpa [#allocation4], 0 }
   0x2   :  { %10 = vsyncpa [#allocation7], 0  ;;  %s156_s9 = smov [#allocation2]   ;;  %s84_s13 = scalar_lea.hbm %s228_s0, 256 }
   0x3   :  { %s16_s10 = sshll.u32 %s156_s9, 4  ;;  %p85_p0 = scmp.ne.s32.totalorder %s228_s0, %s84_s13  ;;  %s17_s10 = int_to_ptr.vmem [resolvable:$true] %s16_s10 }
   0x4   :  { %p88_p1 = scmp.lt.u32.totalorder %s84_s13, %s228_s0 }
   0x6   :  { %p90_p2 = pnand %p88_p1, %p85_p0 }
   0x8   :  { %93 = shalt.err (!%p90_p2)
}
   0x9   :  { %s94_s18 = scalar_lea.vmem %s17_s10, 256  ;;  %p99_p4 = scmp.lt.s32.totalorder %s17_s10, %s17_s10 }
   0xa   :  { %p95_p3 = scmp.ne.s32.totalorder %s17_s10, %s94_s18  ;;  %p100_p5 = scmp.lt.s32.totalorder %s94_s18, %s94_s18 }
   0xc   :  { %p101_p6 = por %p100_p5, %p99_p4 }
   0xe   :  { %p102_p7 = pnand %p101_p6, %p95_p3 }
  0x10   :  { %105 = shalt.err (!%p102_p7)
}
  0x11   :  { %s157_s19 = smov 128   ;;  %s158_s20 = smov 8  }
  0x12   :  { %22 = dma.hbm_to_vmem [thread:$0]  %s228_s0, 256, %s17_s10, [#allocation3], %s157_s19, %s157_s19, %s158_s20  }
  0x13   :  { %150 = dma.done.wait [#allocation3], 256  }
  0x14   :  { %151 = vsyncadd [#allocation3], 4294967040  ;;  %v30_v0 = vlaneseq  ;;  %s159_s23 = smov [#allocation5]   ;;  %v26_v2 = vld [vmem:[#allocation2] sm:$0xff]  ;;  %v27_v3 = vld [vmem:[#allocation2 + $0x8] sm:$0xff]  ;;  %s160_s25 = smov [#allocation6]  }
  0x15   :  { %s51_s24 = sshll.u32 %s159_s23, 4  ;;  %s63_s26 = sshll.u32 %s160_s25, 4  ;;  %v28_v4 = vrot.slane %v26_v2, 7  ;;  %v29_v5 = vrot.slane %v27_v3, 7  ;;  %v39_v6 = vrot.slane %v26_v2, 1  ;;  %v40_v7 = vrot.slane %v27_v3, 1  ;;  %s52_s24 = int_to_ptr.vmem [resolvable:$true] %s51_s24  ;;  %s191_s26 = int_to_ptr.vmem [resolvable:$true] %s63_s26 }
  0x16   :  { %v31_v1 = vshrl.u32 %v30_v0, 7  ;;  %s106_s0 = scalar_lea.vmem %s52_s24, 256  ;;  %p111_p9 = scmp.lt.s32.totalorder %s52_s24, %s52_s24 }
  0x17   :  { %p107_p8 = scmp.ne.s32.totalorder %s52_s24, %s106_s0  ;;  %p112_p10 = scmp.lt.s32.totalorder %s106_s0, %s106_s0 }
  0x18   :  { %vm32_vm0 = vcmp.lt.s32.totalorder %v31_v1, 1  ;;  %vm41_vm1 = vcmp.lt.s32.totalorder %v31_v1, 7 }
  0x19   :  { %v34_v8 = vsel %vm32_vm0, %v29_v5, %v28_v4  ;;  %v33_v9 = vsel %vm32_vm0, %v28_v4, %v29_v5  ;;  %v42_v10 = vsel %vm41_vm1, %v39_v6, %v40_v7  ;;  %v43_v11 = vsel %vm41_vm1, %v40_v7, %v39_v6  ;;  %p113_p11 = por %p112_p10, %p111_p9 }
  0x1a   :  { %35 = vst [vmem:[#allocation5] sm:$0xff] %v34_v8  ;;  %36 = vst [vmem:[#allocation5 + $0x8] sm:$0xff] %v33_v9 }
  0x1b   :  { %44 = vst [vmem:[#allocation6] sm:$0xff] %v42_v10  ;;  %45 = vst [vmem:[#allocation6 + $0x8] sm:$0xff] %v43_v11  ;;  %p114_p12 = pnand %p113_p11, %p107_p8 }
  0x1d   :  { %117 = shalt.err (!%p114_p12)
}
  0x1e   :  { %s118_s29 = scalar_lea.hbm %s229_s1, 256 }
  0x1f   :  { %p119_p13 = scmp.ne.s32.totalorder %s229_s1, %s118_s29  ;;  %p122_p0 = scmp.lt.u32.totalorder %s118_s29, %s229_s1 }
  0x21   :  { %p124_p1 = pnand %p122_p0, %p119_p13 }
  0x23   :  { %127 = shalt.err (!%p124_p1)
}
  0x24   :  { %57 = dma.vmem_to_hbm [thread:$0]  %s52_s24, 256, %s229_s1, [#allocation4], %s157_s19, %s157_s19, %s158_s20  }
  0x25   :  { %s128_s8 = scalar_lea.vmem %s191_s26, 256  ;;  %p133_p3 = scmp.lt.s32.totalorder %s191_s26, %s191_s26 }
  0x26   :  { %p129_p2 = scmp.ne.s32.totalorder %s191_s26, %s128_s8  ;;  %p134_p4 = scmp.lt.s32.totalorder %s128_s8, %s128_s8 }
  0x28   :  { %p135_p5 = por %p134_p4, %p133_p3 }
  0x2a   :  { %p136_p6 = pnand %p135_p5, %p129_p2 }
  0x2c   :  { %139 = shalt.err (!%p136_p6)
}
  0x2d   :  { %s140_s11 = scalar_lea.hbm %s230_s2, 256 }
  0x2e   :  { %p141_p7 = scmp.ne.s32.totalorder %s230_s2, %s140_s11  ;;  %p144_p8 = scmp.lt.u32.totalorder %s140_s11, %s230_s2 }
  0x30   :  { %p146_p9 = pnand %p144_p8, %p141_p7 }
  0x32   :  { %149 = shalt.err (!%p146_p9)
}
  0x33   :  { %69 = dma.vmem_to_hbm [thread:$0]  %s191_s26, 256, %s230_s2, [#allocation7], %s157_s19, %s157_s19, %s158_s20  }
  0x34   :  { %152 = dma.done.wait [#allocation4], 256  }
  0x35   :  { %153 = vsyncadd [#allocation4], 4294967040 }
  0x36   :  { %154 = dma.done.wait [#allocation7], 256  }
  0x37   :  { %155 = vsyncadd [#allocation7], 4294967040 }
  0x38   :  { %76 = vsyncpa [#allocation3], 1 }
  0x39   :  { %77 = vsyncpa [#allocation4], 1 }
  0x3a   :  { %78 = vsyncpa [#allocation7], 1 }

// kernel: _forward_impl.3
= control target key start
LH: loop header
LB: loop body
LE: loop exit
PB: predicated region body
PF: predicated region fallthrough
CT: control target
= control target key end

     0   :  { %s362_s9 = smov 0   ;;  %s386_s0 = inlined_call_operand.vmem [shape: bf16[2,24,6], index: 0, kind: input, shape index: {}]   ;;  %s387_s1 = inlined_call_operand.vmem [shape: bf16[6,128], index: 1, kind: input, shape index: {}]   ;;  %s388_s2 = inlined_call_operand.vmem [shape: f32[2,2,128], index: 2, kind: output, shape index: {}]  }
   0x1 LB: > { %s305_s10 = sadd.s32 4294967295, %s345_s9   ;;  %p309_p0 = scmp.ge.s32.totalorder %s345_s9, 1  ;;  %s345_s9 = sphi %s362_s9, %s12_s9  }
   0x2   : > { %p112_p1 = scmp.lt.s32.totalorder %s345_s9, 3 }
   0x4   : > { %p113_p2 = pnand %p309_p0, %p112_p1 }
   0x5   : > { %v146_v0 = vld [vmem:[%s387_s1] sm:$0x7] (!%p113_p2)  ;;  %vm162_vm0 = vcmask (!%p113_p2), 1042432   ;;  %p133_p3 = scmp.lt.s32.totalorder (!%p113_p2), %s305_s10, 1  ;;  %vm155_vm1 = vcmask (!%p113_p2), 48128   ;;  %v214_v4 = vlaneseq (!%p113_p2)  ;;  %vm249_vm4 = vcmask (!%p113_p2), 1040384  }
   0x6   : > { %116 = sbr.rel (%p113_p2) target bundleno = 254 (0xfe), region = 28  ;;  %327 = vmatprep.subr.msk.bf16.mxu0 (!%p113_p2), %vm162_vm0, %v146_v0  ;;  %v164_v1 = vsel (!%p113_p2), %vm162_vm0, %v146_v0, 0 }
   0x7   : > { %322 = vmatpush3.bf16.msra.mxu0 (!%p113_p2), %v164_v1  ;;  %v215_v5 = vshrl.u32 (!%p113_p2), %v214_v4, 7 }
   0x9   : > { %v217_v6 = vadd.s32 (!%p113_p2), 16, %v215_v5  ;;  %vm218_vm2 = vcmp.ge.s32.totalorder (!%p113_p2), %v215_v5, 1 }
   0xb   : > { %vm223_vm3 = vcmp.le.s32.totalorder (!%p113_p2), %v217_v6, 16 }
   0xd   : > { %s390_s10 = smov (!%p133_p3, %s305_s10), 1 }
   0xe   : > { %s328_s13 = smul.u32 12, %s390_s10  ;;  %s311_s17 = sshll.u32 %s390_s10, 1 }
   0xf   : > { %s141_s20 = scalar_lea.vmem %s388_s2, %s311_s17 }
  0x10   : > { %s137_s16 = scalar_lea.vmem %s386_s0, %s328_s13 }
  0x11   : > { %v337_v2 = vld [vmem:[%s137_s16] sm:$0xff]   ;;  %v338_v3 = vld [vmem:[%s137_s16 + $0x8] ss:$0 sps:$4 sm:$0xff]  }
  0x12   : > { %323 = vmatprep.mubr.msk.bf16.mxu0 %vm155_vm1, %v337_v2 }
  0x13   : > { %324 = vmatmul.mubr.msk.bf16.vlgmr.msra.gmra.mrb[0].mxu0 %vm155_vm1, %v338_v3 }
  0xe6   : > { %v325_v7 = vpop.f32.mrb[0].mxu0 }
  0xe7   : > { %v200_v8 = vpop.f32.mrb[1].mxu0  ;;  %v229_v11 = vsel %vm223_vm3, %v325_v7, 0.0 }
  0xe8   : > { %v227_v9 = vsel %vm218_vm2, %v200_v8, 0.0  ;;  %v326_v10 = vpop.f32.mrb[2].mxu0  ;;  %v240_v16 = vmul.f32 %v229_v11, %v229_v11 }
  0xe9   : > { %v238_v12 = vmul.f32 %v227_v9, %v227_v9  ;;  %v203_v13 = vpop.f32.mrb[3].mxu0 }
  0xea   : > { %v230_v14 = vadd.f32 %v227_v9, %v203_v13  ;;  %v239_v15 = vmul.f32 %v203_v13, %v203_v13 }
  0xec   : > { %v231_v17 = vadd.f32 %v230_v14, %v229_v11  ;;  %v241_v18 = vadd.f32 %v239_v15, %v238_v12 }
  0xee   : > { %v232_v19 = vrot.slane %v231_v17, 4  ;;  %v242_v20 = vadd.f32 %v241_v18, %v240_v16 }
  0xf0   : > { %v233_v21 = vadd.f32 %v232_v19, %v231_v17  ;;  %v243_v22 = vrot.slane %v242_v20, 4 }
  0xf2   : > { %v234_v23 = vrot.slane %v233_v21, 2  ;;  %v244_v24 = vadd.f32 %v243_v22, %v242_v20 }
  0xf4   : > { %v235_v25 = vadd.f32 %v234_v23, %v233_v21  ;;  %v245_v26 = vrot.slane %v244_v24, 2 }
  0xf6   : > { %v236_v27 = vrot.slane %v235_v25, 1  ;;  %v246_v28 = vadd.f32 %v245_v26, %v244_v24 }
  0xf8   : > { %v247_v29 = vrot.slane %v246_v28, 1  ;;  %v237_v30 = vadd.f32 %v236_v27, %v235_v25 }
  0xfa   : > { %v248_v31 = vadd.f32 %v247_v29, %v246_v28 }
  0xfc   : > { %v250_v32 = vsel %vm249_vm4, %v237_v30, %v248_v31 }
  0xfd   : > { %251 = vst [vmem:[%s141_s20] sm:$0x3] %v250_v32 }
  0xfe PF: > { %s12_s9 = sadd.s32 1, %s345_s9  }
  0xff   : > { %p9_p4 = scmp.ge.s32.totalorder %s12_s9, 4  }
 0x101   :  { %11 = sbr.rel (!%p9_p4) target bundleno = 1 (0x1), region = 58 }

// kernel: _forward_impl.5
= control target key start
LH: loop header
LB: loop body
LE: loop exit
PB: predicated region body
PF: predicated region fallthrough
CT: control target
= control target key end

     0   :  { %s430_s15 = smov 0   ;;  %s472_s0 = inlined_call_operand.vmem [shape: f32[2,24,128], index: 0, kind: input, shape index: {}]   ;;  %s473_s1 = inlined_call_operand.vmem [shape: f32[1,128], index: 1, kind: input, shape index: {}]   ;;  %s474_s2 = inlined_call_operand.vmem [shape: f32[1,128], index: 2, kind: input, shape index: {}]   ;;  %s475_s3 = inlined_call_operand.vmem [shape: bf16[3,24,128], index: 3, kind: input, shape index: {}]   ;;  %s476_s4 = inlined_call_operand.vmem [shape: f32[2,8,128], index: 4, kind: output, shape index: {}]  }
   0x1 LB: > { %s357_s16 = sadd.s32 4294967295, %s403_s15   ;;  %p361_p0 = scmp.ge.s32.totalorder %s403_s15, 1  ;;  %s403_s15 = sphi %s430_s15, %s14_s15  }
   0x2   : > { %p162_p1 = scmp.lt.s32.totalorder %s403_s15, 3 }
   0x4   : > { %p163_p2 = pnand %p361_p0, %p162_p1 }
   0x5   : > { %p187_p3 = scmp.lt.s32.totalorder (!%p163_p2), %s357_s16, 1  ;;  %v364_v0 = vld [vmem:[%s473_s1] ss:$0 sm:$0xff] (!%p163_p2)  ;;  %v243_v15 = vld [vmem:[%s475_s3 + $0x8] sm:$0xff] (!%p163_p2)   ;;  %v386_v16 = vld [vmem:[%s475_s3 + $0x10] sm:$0xff] (!%p163_p2)   ;;  %vm225_vm0 = vcmask (!%p163_p2), 1046528   ;;  %v239_v53 = vlaneseq (!%p163_p2) }
   0x6   : > { %166 = sbr.rel (%p163_p2) target bundleno = 54 (0x36), region = 36  ;;  %v365_v1 = vld [vmem:[%s474_s2] ss:$0 sm:$0xff] (!%p163_p2)  ;;  %v387_v17 = vld [vmem:[%s475_s3 + $0x18] sm:$0xff] (!%p163_p2)   ;;  %v246_v23 = vunpack.c.l.bf16 (!%p163_p2), %v243_v15  ;;  %v380_v25 = vunpack.c.l.bf16 (!%p163_p2), %v386_v16  ;;  %v381_v26 = vunpack.c.h.bf16 (!%p163_p2), %v386_v16  ;;  %v265_v27 = vunpack.c.h.bf16 (!%p163_p2), %v243_v15 }
   0x7   : > { %v375_v11 = vld [vmem:[%s475_s3] sm:$0xff] (!%p163_p2)   ;;  %v384_v28 = vunpack.c.l.bf16 (!%p163_p2), %v387_v17  ;;  %v385_v32 = vunpack.c.h.bf16 (!%p163_p2), %v387_v17  ;;  %v240_v60 = vshrl.u32 (!%p163_p2), %v239_v53, 7 }
   0x8   : > { %v376_v18 = vunpack.c.l.bf16 (!%p163_p2), %v375_v11  ;;  %v377_v19 = vunpack.c.h.bf16 (!%p163_p2), %v375_v11  ;;  %v371_v24 = vld [vmem:[%s475_s3 + $0x20] sm:$0xf] (!%p163_p2) }
   0x9   : > { %v288_v36 = vunpack.c.l.bf16 (!%p163_p2), %v371_v24  ;;  %vm258_vm1 = vcmp.eq.s32.totalorder (!%p163_p2), %v240_v60, 0  ;;  %vm279_vm2 = vcmp.eq.s32.totalorder (!%p163_p2), %v240_v60, 1  ;;  %vm300_vm3 = vcmp.eq.s32.totalorder (!%p163_p2), %v240_v60, 2 }
   0xd   : > { %s478_s16 = smov (!%p187_p3, %s357_s16), 1 }
   0xe   : > { %s388_s17 = smul.u32 24, %s478_s16  ;;  %s363_s9 = sshll.u32 %s478_s16, 3 }
   0xf   : > { %s195_s12 = scalar_lea.vmem %s476_s4, %s363_s9 }
  0x10   : > { %s191_s22 = scalar_lea.vmem %s472_s0, %s388_s17 }
  0x11   : > { %v196_v2 = vld [vmem:[%s191_s22] sm:$0xff]  ;;  %v197_v3 = vld [vmem:[%s191_s22 + $0x8] sm:$0xff]  ;;  %v198_v4 = vld [vmem:[%s191_s22 + $0x10] sm:$0xff] }
  0x12   : > { %v206_v5 = vmul.f32 %v364_v0, %v196_v2  ;;  %v207_v6 = vmul.f32 %v364_v0, %v197_v3  ;;  %v208_v7 = vmul.f32 %v364_v0, %v198_v4 }
  0x14   : > { %v216_v8 = vadd.f32 %v365_v1, %v206_v5  ;;  %v217_v9 = vadd.f32 %v365_v1, %v207_v6  ;;  %v218_v10 = vadd.f32 %v365_v1, %v208_v7 }
  0x16   : > { %v219_v12 = vmax.f32 %v216_v8, 0.0  ;;  %v220_v13 = vmax.f32 %v217_v9, 0.0  ;;  %v221_v14 = vmax.f32 %v218_v10, 0.0 }
  0x18   : > { %v226_v20 = vrot.slane %v219_v12, 1  ;;  %v227_v21 = vrot.slane %v220_v13, 1  ;;  %v229_v22 = vrot.slane %v221_v14, 1 }
  0x1a   : > { %v228_v29 = vsel %vm225_vm0, %v226_v20, %v227_v21  ;;  %v230_v30 = vsel %vm225_vm0, %v227_v21, %v229_v22  ;;  %v235_v31 = vsel %vm225_vm0, %v229_v22, %v226_v20 }
  0x1b   : > { %v236_v33 = vmax.f32 %v219_v12, %v228_v29  ;;  %v237_v34 = vmax.f32 %v220_v13, %v230_v30  ;;  %v238_v35 = vmax.f32 %v221_v14, %v235_v31 }
  0x1d   : > { %v247_v37 = vmul.f32 %v376_v18, %v236_v33  ;;  %v248_v38 = vmul.f32 %v377_v19, %v237_v34  ;;  %v249_v39 = vmul.f32 %v246_v23, %v238_v35  ;;  %v268_v40 = vmul.f32 %v265_v27, %v236_v33 }
  0x1e   : > { %v269_v41 = vmul.f32 %v380_v25, %v237_v34  ;;  %v270_v42 = vmul.f32 %v381_v26, %v238_v35  ;;  %v289_v43 = vmul.f32 %v384_v28, %v236_v33  ;;  %v290_v44 = vmul.f32 %v385_v32, %v237_v34 }
  0x1f   : > { %v250_v45 = vadd.f32 %v248_v38, %v247_v37  ;;  %v291_v46 = vmul.f32 %v288_v36, %v238_v35 }
  0x20   : > { %v271_v47 = vadd.f32 %v269_v41, %v268_v40  ;;  %v292_v48 = vadd.f32 %v290_v44, %v289_v43 }
  0x21   : > { %v251_v49 = vadd.f32 %v250_v45, %v249_v39 }
  0x22   : > { %v272_v50 = vadd.f32 %v271_v47, %v270_v42  ;;  %v293_v51 = vadd.f32 %v292_v48, %v291_v46 }
  0x23   : > { %v252_v52 = vrot.slane %v251_v49, 4 }
  0x24   : > { %v273_v54 = vrot.slane %v272_v50, 4  ;;  %v294_v55 = vrot.slane %v293_v51, 4 }
  0x25   : > { %v253_v56 = vadd.f32 %v252_v52, %v251_v49 }
  0x26   : > { %v274_v57 = vadd.f32 %v273_v54, %v272_v50  ;;  %v295_v58 = vadd.f32 %v294_v55, %v293_v51 }
  0x27   : > { %v254_v59 = vrot.slane %v253_v56, 2 }
  0x28   : > { %v275_v61 = vrot.slane %v274_v57, 2  ;;  %v296_v62 = vrot.slane %v295_v58, 2 }
  0x29   : > { %v255_v63 = vadd.f32 %v254_v59, %v253_v56 }
  0x2a   : > { %v276_v0 = vadd.f32 %v275_v61, %v274_v57  ;;  %v297_v1 = vadd.f32 %v296_v62, %v295_v58 }
  0x2b   : > { %v256_v2 = vrot.slane %v255_v63, 1 }
  0x2c   : > { %v277_v3 = vrot.slane %v276_v0, 1  ;;  %v298_v4 = vrot.slane %v297_v1, 1 }
  0x2d   : > { %v257_v5 = vadd.f32 %v256_v2, %v255_v63 }
  0x2e   : > { %v278_v6 = vadd.f32 %v277_v3, %v276_v0  ;;  %v299_v7 = vadd.f32 %v298_v4, %v297_v1 }
  0x2f   : > { %v259_v8 = vsel %vm258_vm1, %v257_v5, 0.0 }
  0x30   : > { %v280_v9 = vsel %vm279_vm2, %v278_v6, 0.0  ;;  %v301_v10 = vsel %vm300_vm3, %v299_v7, 0.0 }
  0x31   : > { %v281_v11 = vadd.f32 %v280_v9, %v259_v8 }
  0x33   : > { %v302_v12 = vadd.f32 %v301_v10, %v281_v11 }
  0x35   : > { %303 = vst [vmem:[%s195_s12] sm:$0xff] %v302_v12 }
  0x36 PF: > { %s14_s15 = sadd.s32 1, %s403_s15  }
  0x37   : > { %p11_p4 = scmp.ge.s32.totalorder %s14_s15, 4  }
  0x39   :  { %13 = sbr.rel (!%p11_p4) target bundleno = 1 (0x1), region = 68 }

// kernel: _forward_impl.4
= control target key start
LH: loop header
LB: loop body
LE: loop exit
PB: predicated region body
PF: predicated region fallthrough
CT: control target
= control target key end

     0   :  { %s1018_s21 = smov 0   ;;  %s1136_s0 = inlined_call_operand.vmem [shape: bf16[2,24,6], index: 0, kind: input, shape index: {}]   ;;  %s1137_s1 = inlined_call_operand.vmem [shape: bf16[6,128], index: 1, kind: input, shape index: {}]   ;;  %s1138_s2 = inlined_call_operand.vmem [shape: f32[1,128], index: 2, kind: input, shape index: {}]   ;;  %s1139_s3 = inlined_call_operand.vmem [shape: f32[1,128], index: 3, kind: input, shape index: {}]   ;;  %s1140_s4 = inlined_call_operand.vmem [shape: bf16[384,128], index: 4, kind: input, shape index: {}]   ;;  %s1141_s5 = inlined_call_operand.vmem [shape: f32[2,24,128], index: 5, kind: output, shape index: {0}]   ;;  %s1142_s6 = inlined_call_operand.vmem [shape: f32[2,2,128], index: 6, kind: output, shape index: {1}]  }
   0x1 LB: > { %s822_s22 = sadd.s32 4294967295, %s978_s21   ;;  %p826_p0 = scmp.ge.s32.totalorder %s978_s21, 1  ;;  %s978_s21 = sphi %s1018_s21, %s17_s21  }
   0x2   : > { %p215_p1 = scmp.lt.s32.totalorder %s978_s21, 3 }
   0x4   : > { %p216_p2 = pnand %p826_p0, %p215_p1 }
   0x5   : > { %v267_v0 = vld [vmem:[%s1137_s1] sm:$0x7] (!%p216_p2)  ;;  %vm283_vm0 = vcmask (!%p216_p2), 1042432   ;;  %p249_p3 = scmp.lt.s32.totalorder (!%p216_p2), %s822_s22, 1  ;;  %v951_v5 = vld [vmem:[%s1140_s4 + $0x48] sm:$0xff] (!%p216_p2)   ;;  %vm276_vm1 = vcmask (!%p216_p2), 48128   ;;  %v358_v37 = vlaneseq (!%p216_p2) }
   0x6   : > { %219 = sbr.rel (%p216_p2) target bundleno = 488 (0x1e8), region = 40  ;;  %v948_v1 = vld [vmem:[%s1140_s4 + $0x40] sm:$0xff] (!%p216_p2)   ;;  %932 = vmatprep.subr.msk.bf16.mxu0 (!%p216_p2), %vm283_vm0, %v267_v0  ;;  %v285_v2 = vsel (!%p216_p2), %vm283_vm0, %v267_v0, 0  ;;  %v952_v6 = vld [vmem:[%s1140_s4 + $0x8] sm:$0xff] (!%p216_p2)   ;;  %v954_v10 = vld [vmem:[%s1140_s4 + $0x50] sm:$0xff] (!%p216_p2)   ;;  %vm374_vm2 = vcmask (!%p216_p2), 1046528  }
   0x7   : > { %v949_v3 = vld [vmem:[%s1140_s4] sm:$0xff] (!%p216_p2)   ;;  %907 = vmatpush3.bf16.msra.mxu0 (!%p216_p2), %v285_v2  ;;  %868 = vmatprep.subr.bf16.mxu1 (!%p216_p2), %v948_v1  ;;  %v953_v7 = vld [vmem:[%s1140_s4 + $0x88] sm:$0xff] (!%p216_p2)   ;;  %v955_v11 = vld [vmem:[%s1140_s4 + $0x10] sm:$0xff] (!%p216_p2)   ;;  %v359_v43 = vshrl.u32 (!%p216_p2), %v358_v37, 7  ;;  %v980_v52 = vmov (!%p216_p2), 0.0   ;;  %vm981_vm4 = vmmov (!%p216_p2), 1  }
   0x8   : > { %v950_v4 = vld [vmem:[%s1140_s4 + $0x80] sm:$0xff] (!%p216_p2)   ;;  %869 = vmatpush3.bf16.msra.mxu1 (!%p216_p2), %v949_v3  ;;  %v956_v12 = vld [vmem:[%s1140_s4 + $0x90] sm:$0xff] (!%p216_p2)   ;;  %v957_v13 = vld [vmem:[%s1140_s4 + $0x58] sm:$0xff] (!%p216_p2)   ;;  %v412_v53 = vrot.slane (!%p216_p2), %v980_v52, 1  ;;  %v392_v54 = vrot.slane (!%p216_p2), %v980_v52, 7  ;;  %vm396_vm6 = vcmask (!%p216_p2), 1040384  }
   0x9   : > { %912 = vmatprep.subr.bf16.mxu0 (!%p216_p2), %v950_v4  ;;  %870 = vmatprep.subr.bf16.mxu1 (!%p216_p2), %v951_v5  ;;  %v958_v14 = vld [vmem:[%s1140_s4 + $0x18] sm:$0xff] (!%p216_p2)   ;;  %v960_v16 = vld [vmem:[%s1140_s4 + $0x60] sm:$0xff] (!%p216_p2)   ;;  %v963_v19 = vld [vmem:[%s1140_s4 + $0x68] sm:$0xff] (!%p216_p2)   ;;  %vm362_vm3 = vcmp.ge.s32.totalorder (!%p216_p2), %v359_v43, 1  ;;  %v982_v5 = vmov (!%p216_p2), 0.0|0.0  }
   0xa   : > { %v959_v15 = vld [vmem:[%s1140_s4 + $0x98] sm:$0xff] (!%p216_p2)   ;;  %v961_v17 = vld [vmem:[%s1140_s4 + $0x20] sm:$0xff] (!%p216_p2)   ;;  %v964_v20 = vld [vmem:[%s1140_s4 + $0x28] sm:$0xff] (!%p216_p2)  }
   0xb   : > { %v962_v18 = vld [vmem:[%s1140_s4 + $0xa0] sm:$0xff] (!%p216_p2)   ;;  %v965_v21 = vld [vmem:[%s1140_s4 + $0xa8] sm:$0xff] (!%p216_p2)   ;;  %v966_v22 = vld [vmem:[%s1140_s4 + $0x70] sm:$0xff] (!%p216_p2)  }
   0xc   : > { %871 = vmatpush3.bf16.msra.mxu1 (!%p216_p2), %v952_v6  ;;  %v967_v23 = vld [vmem:[%s1140_s4 + $0x30] sm:$0xff] (!%p216_p2)   ;;  %v969_v25 = vld [vmem:[%s1140_s4 + $0x78] sm:$0xff] (!%p216_p2)   ;;  %v834_v28 = vld [vmem:[%s1138_s2] ss:$0 sm:$0xff] (!%p216_p2) }
   0xd   : > { %s1144_s22 = smov (!%p249_p3, %s822_s22), 1  ;;  %872 = vmatprep.subr.bf16.mxu1 %v954_v10  ;;  %v968_v24 = vld [vmem:[%s1140_s4 + $0xb0] sm:$0xff]   ;;  %v970_v26 = vld [vmem:[%s1140_s4 + $0x38] sm:$0xff]   ;;  %v835_v30 = vld [vmem:[%s1139_s3] ss:$0 sm:$0xff] }
   0xe   : > { %s933_s7 = smul.u32 12, %s1144_s22  ;;  %v971_v27 = vld [vmem:[%s1140_s4 + $0xb8] sm:$0xff]   ;;  %vm860_vm5 = vmpackc.low %vm981_vm4, %vm362_vm3  ;;  %s829_s17 = sshll.u32 %s1144_s22, 1 }
   0xf   : > { %s934_s13 = smul.u32 24, %s1144_s22  ;;  %s262_s20 = scalar_lea.vmem %s1142_s6, %s829_s17 }
  0x10   : > { %s253_s14 = scalar_lea.vmem %s1136_s0, %s933_s7  ;;  %873 = vmatpush3.bf16.msra.mxu1 %v955_v11 }
  0x11   : > { %v946_v8 = vld [vmem:[%s253_s14] sm:$0xff]   ;;  %v947_v9 = vld [vmem:[%s253_s14 + $0x8] ss:$0 sps:$4 sm:$0xff]   ;;  %874 = vmatprep.subr.bf16.mxu1 %v957_v13  ;;  %s258_s16 = scalar_lea.vmem %s1141_s5, %s934_s13 }
  0x12   : > { %908 = vmatprep.mubr.msk.bf16.mxu0 %vm276_vm1, %v946_v8 }
  0x13   : > { %909 = vmatmul.mubr.msk.bf16.vlgmr.msra.gmra.mrb[0].mxu0 %vm276_vm1, %v947_v9 }
  0x14   : > { %913 = vmatpush3.bf16.msra.mxu0 %v950_v4  ;;  %875 = vmatpush3.bf16.msra.mxu1 %v958_v14 }
  0x15   : > { %914 = vmatprep.subr.bf16.mxu0 %v953_v7  ;;  %876 = vmatprep.subr.bf16.mxu1 %v960_v16 }
  0x18   : > { %915 = vmatpush3.bf16.msra.mxu0 %v953_v7  ;;  %877 = vmatpush3.bf16.msra.mxu1 %v961_v17 }
  0x19   : > { %916 = vmatprep.subr.bf16.mxu0 %v956_v12  ;;  %878 = vmatprep.subr.bf16.mxu1 %v963_v19 }
  0x1c   : > { %917 = vmatpush3.bf16.msra.mxu0 %v956_v12  ;;  %879 = vmatpush3.bf16.msra.mxu1 %v964_v20 }
  0x1d   : > { %918 = vmatprep.subr.bf16.mxu0 %v959_v15  ;;  %880 = vmatprep.subr.bf16.mxu1 %v966_v22 }
  0x20   : > { %919 = vmatpush3.bf16.msra.mxu0 %v959_v15  ;;  %881 = vmatpush3.bf16.msra.mxu1 %v967_v23 }
  0x21   : > { %920 = vmatprep.subr.bf16.mxu0 %v962_v18  ;;  %882 = vmatprep.subr.bf16.mxu1 %v969_v25 }
  0x24   : > { %921 = vmatpush3.bf16.msra.mxu0 %v962_v18  ;;  %883 = vmatpush3.bf16.msra.mxu1 %v970_v26 }
  0x25   : > { %922 = vmatprep.subr.bf16.mxu0 %v965_v21 }
  0x28   : > { %923 = vmatpush3.bf16.msra.mxu0 %v965_v21 }
  0x29   : > { %924 = vmatprep.subr.bf16.mxu0 %v968_v24 }
  0x2c   : > { %925 = vmatpush3.bf16.msra.mxu0 %v968_v24 }
  0x2d   : > { %926 = vmatprep.subr.bf16.mxu0 %v971_v27 }
  0x30   : > { %927 = vmatpush3.bf16.msra.mxu0 %v971_v27 }
  0xe6   : > { %v910_v29 = vpop.f32.mrb[0].mxu0 }
  0xe7   : > { %v344_v31 = vmul.f32 %v910_v29, %v834_v28  ;;  %v321_v32 = vpop.f32.mrb[1].mxu0 }
  0xe8   : > { %v342_v33 = vmul.f32 %v834_v28, %v321_v32  ;;  %v911_v34 = vpop.f32.mrb[2].mxu0 }
  0xe9   : > { %v354_v35 = vadd.f32 %v835_v30, %v344_v31  ;;  %v324_v36 = vpop.f32.mrb[3].mxu0 }
  0xea   : > { %v352_v38 = vadd.f32 %v835_v30, %v342_v33  ;;  %v343_v39 = vmul.f32 %v834_v28, %v324_v36 }
  0xeb   : > { %v357_v40 = vmax.f32 %v354_v35, 0.0 }
  0xec   : > { %v355_v41 = vmax.f32 %v352_v38, 0.0  ;;  %v353_v42 = vadd.f32 %v835_v30, %v343_v39 }
  0xed   : > { %v378_v45 = vrot.slane %v357_v40, 1 }
  0xee   : > { %v356_v44 = vmax.f32 %v353_v42, 0.0  ;;  %v375_v46 = vrot.slane %v355_v41, 1 }
  0xf0   : > { %v376_v47 = vrot.slane %v356_v44, 1 }
  0xf2   : > { %v379_v48 = vsel %vm374_vm2, %v376_v47, %v378_v45  ;;  %v377_v49 = vsel %vm374_vm2, %v375_v46, %v376_v47 }
  0xf3   : > { %v386_v50 = vmax.f32 %v356_v44, %v379_v48  ;;  %v385_v51 = vmax.f32 %v355_v41, %v377_v49 }
  0xf5   : > { %v388_v55 = vsel %vm362_vm3, %v385_v51, 0.0  ;;  %v861_v56 = vpack.c.bf16 %v386_v50, %v385_v51  ;;  %v398_v57 = vrot.slane %v386_v50, 7  ;;  %v410_v58 = vrot.slane %v386_v50, 1 }
  0xf6   : > { %v397_v59 = vrot.slane %v388_v55, 7  ;;  %v409_v60 = vrot.slane %v388_v55, 1 }
  0xf7   : > { %862 = vmatprep.mubr.msk.bf16.mxu1 %vm860_vm5, %v861_v56  ;;  %v413_v61 = vsel %vm374_vm2, %v410_v58, %v412_v53  ;;  %v400_v6 = vsel %vm396_vm6, %v398_v57, %v392_v54 }
  0xf8   : > { %v399_v62 = vsel %vm396_vm6, %v397_v59, %v398_v57  ;;  %v404_v63 = vsel %vm396_vm6, %v392_v54, %v397_v59  ;;  %v411_v0 = vsel %vm374_vm2, %v409_v60, %v410_v58  ;;  %v418_v1 = vsel %vm374_vm2, %v412_v53, %v409_v60 }
  0xf9   : > { %v405_v2 = vpack.c.bf16 %v399_v62, %v404_v63  ;;  %v419_v3 = vpack.c.bf16 %v413_v61, %v411_v0  ;;  %v420_v4 = vpack.c.bf16 %v418_v1, %v418_v1  ;;  %v406_v7 = vpack.c.bf16 %v400_v6, %v400_v6 }
  0xfb   : > { %646 = vmatmul.mubr.bf16.vlgmr.msra.gmra.mrb[0].mxu1 %v405_v2  ;;  %928 = vmatprep.mubr.bf16.mxu0 %v419_v3 }
  0xfc   : > { %929 = vmatmul.mubr.bf16.vlgmr.msra.gmra.mrb[4].mxu0 %v420_v4  ;;  %653 = vmatprep.mubr.bf16.mxu1 %v982_v5 }
 0x103   : > { %654 = vmatmul.mubr.bf16.gmra.mrb[4].mxu1 %v406_v7 }
 0x1ce   : > { %v884_v8 = vpop.f32.mrb[0].mxu1 }
 0x1cf   : > { %v885_v9 = vpop.f32.mrb[1].mxu1  ;;  %v930_v10 = vpop.f32.mrb[4].mxu0 }
 0x1d0   : > { %v886_v11 = vadd.f32 %v885_v9, %v884_v8  ;;  %v887_v12 = vpop.f32.mrb[2].mxu1  ;;  %v695_v13 = vpop.f32.mrb[5].mxu0 }
 0x1d1   : > { %v888_v14 = vpop.f32.mrb[3].mxu1  ;;  %v931_v15 = vpop.f32.mrb[6].mxu0 }
 0x1d2   : > { %v696_v16 = vadd.f32 %v886_v11, %v695_v13  ;;  %v889_v17 = vadd.f32 %v888_v14, %v887_v12  ;;  %v698_v18 = vpop.f32.mrb[7].mxu0 }
 0x1d4   : > { %v709_v19 = vsel %vm362_vm3, %v696_v16, 0.0  ;;  %733 = vst [vmem:[%s258_s16] sm:$0xff] %v696_v16  ;;  %v699_v20 = vadd.f32 %v889_v17, %v698_v18 }
 0x1d5   : > { %v720_v21 = vmul.f32 %v709_v19, %v709_v19 }
 0x1d6   : > { %v712_v22 = vadd.f32 %v709_v19, %v699_v20  ;;  %v721_v23 = vmul.f32 %v699_v20, %v699_v20  ;;  %734 = vst [vmem:[%s258_s16 + $0x8] sm:$0xff] %v699_v20  ;;  %v890_v24 = vpop.f32.mrb[4].mxu1 }
 0x1d7   : > { %v891_v25 = vpop.f32.mrb[5].mxu1 }
 0x1d8   : > { %v714_v26 = vrot.slane %v712_v22, 4  ;;  %v723_v27 = vadd.f32 %v721_v23, %v720_v21  ;;  %v892_v28 = vadd.f32 %v891_v25, %v890_v24  ;;  %v893_v29 = vpop.f32.mrb[6].mxu1 }
 0x1d9   : > { %v894_v30 = vpop.f32.mrb[7].mxu1 }
 0x1da   : > { %v715_v31 = vadd.f32 %v714_v26, %v712_v22  ;;  %v725_v32 = vrot.slane %v723_v27, 4  ;;  %v704_v33 = vadd.f32 %v930_v10, %v892_v28 }
 0x1dc   : > { %v716_v34 = vrot.slane %v715_v31, 2  ;;  %v726_v35 = vadd.f32 %v725_v32, %v723_v27  ;;  %735 = vst [vmem:[%s258_s16 + $0x10] sm:$0xff] %v704_v33 }
 0x1de   : > { %v717_v36 = vadd.f32 %v716_v34, %v715_v31  ;;  %v727_v37 = vrot.slane %v726_v35, 2 }
 0x1e0   : > { %v718_v38 = vrot.slane %v717_v36, 1  ;;  %v728_v39 = vadd.f32 %v727_v37, %v726_v35 }
 0x1e2   : > { %v729_v40 = vrot.slane %v728_v39, 1  ;;  %v719_v41 = vadd.f32 %v718_v38, %v717_v36 }
 0x1e4   : > { %v730_v42 = vadd.f32 %v729_v40, %v728_v39 }
 0x1e6   : > { %v731_v43 = vsel %vm396_vm6, %v719_v41, %v730_v42 }
 0x1e7   : > { %732 = vst [vmem:[%s262_s20] sm:$0x3] %v731_v43 }
 0x1e8 PF: > { %s17_s21 = sadd.s32 1, %s978_s21  }
 0x1e9   : > { %p14_p4 = scmp.ge.s32.totalorder %s17_s21, 4  }
 0x1eb   :  { %16 = sbr.rel (!%p14_p4) target bundleno = 1 (0x1), region = 82 }

</bundles_post_ra>
